<compile_context>
chip_gen: v6e
topology: v6e:2x2x1
jax: 0.10.0
libtpu: 0.0.40
codegen_flags: <defaults>
</compile_context>

<pallas_src>
import functools

import jax
import jax.numpy as jnp
from jax import lax
from jax.experimental import pallas as pl
from jax.experimental.pallas import tpu as pltpu


# --------------------------------------------------------------------------
# helpers (parameter / bias construction - plain JAX glue)
# --------------------------------------------------------------------------
def get_relative_position_index_1d(T: int) -> jnp.ndarray:
    """1D relative positional index, identical to the PyTorch helper."""
    coords = jnp.arange(T)
    rel = coords[:, None] - coords[None, :]          # (T, T)
    return rel + (T - 1)                             # values in [0, 2T-2]


def _pick_head_group(num_heads: int, head_dim: int) -> int:
    """Smallest divisor G of num_heads with (G*head_dim) % 128 == 0, else num_heads."""
    for g in range(1, num_heads + 1):
        if num_heads % g == 0 and (g * head_dim) % 128 == 0:
            return g
    return num_heads


def _pick_kv_tile(seq: int, max_tile: int) -> int:
    """Largest lane-friendly (multiple-of-128) divisor of seq <= max_tile, else seq."""
    if seq <= max_tile:
        return seq
    for t in range(max_tile, 127, -1):
        if seq % t == 0 and t % 128 == 0:
            return t
    return seq   # no lane-friendly divisor -> single whole-S step (legal block)


# --------------------------------------------------------------------------
# Pallas kernel: one (head-group, batch, kv-tile) step with online softmax
# --------------------------------------------------------------------------
def _msa_kernel(q_ref, k_ref, v_ref, *rest, heads_per_group, head_dim, scale,
                has_bias, mxu_dtype):
    # q_ref:    (1, S,  G*D)   resident across the kv axis
    # k_ref:    (1, Tk, G*D)
    # v_ref:    (1, Tk, G*D)
    # bias_ref: (G, S, Tk) bf16   (only when has_bias)
    # o_ref:    (1, S, G*D)    written once at the last kv step (lane-dense)
    # m_sc/l_sc:(G, S, 1) f32  running row max / row sum per head
    # acc_sc:   (S, G*D) f32   output accumulator
    if has_bias:
        bias_ref, o_ref, m_sc, l_sc, acc_sc = rest
    else:
        o_ref, m_sc, l_sc, acc_sc = rest
        bias_ref = None

    t = pl.program_id(2)
    kt = pl.num_programs(2)
    D = head_dim

    @pl.when(t == 0)
    def _init():
        m_sc[...] = jnp.full_like(m_sc, -jnp.inf)
        l_sc[...] = jnp.zeros_like(l_sc)
        acc_sc[...] = jnp.zeros_like(acc_sc)

    for h in range(heads_per_group):                 # static unroll, G is small
        sl = slice(h * D, (h + 1) * D)
        q = q_ref[0, :, sl]                          # (S, D)
        k = k_ref[0, :, sl]                          # (Tk, D)
        v = v_ref[0, :, sl]                          # (Tk, D)

        # fold scale into q (SxD mul instead of SxS); MXU operands in mxu_dtype
        # (bf16 for v5e throughput / bf16-x inputs), accumulate in f32; contract
        # on the last dims (no k.T materialization).
        s = lax.dot_general(
            (q * scale).astype(mxu_dtype), k.astype(mxu_dtype),
            dimension_numbers=(((1,), (1,)), ((), ())),
            preferred_element_type=jnp.float32)      # (S, Tk) f32
        if has_bias:
            s = s + bias_ref[h].astype(jnp.float32)  # bf16 bias, f32 add

        # flash / online softmax in f32
        # TODO(synk): on v6e/v7x the EUP exp is the saturating slot for D < 128; a
        #             bf16 exp with f32 re-accumulation would ~2x that slot.
        m_prev = m_sc[h]                                              # (S, 1)
        m_new = jnp.maximum(m_prev, jnp.max(s, axis=-1, keepdims=True))
        alpha = jnp.exp(m_prev - m_new)
        p = jnp.exp(s - m_new)
        l_sc[h] = alpha * l_sc[h] + jnp.sum(p, axis=-1, keepdims=True)
        pv = jnp.dot(p.astype(mxu_dtype), v.astype(mxu_dtype),
                     preferred_element_type=jnp.float32)              # (S, D)
        acc_sc[:, sl] = alpha * acc_sc[:, sl] + pv
        m_sc[h] = m_new
        # attn_drop has p=0.0 in this config -> identity

    @pl.when(t == kt - 1)
    def _finalize():
        # normalize per head into the VMEM accumulator (one head live at a time),
        # then one lane-dense full-width store.
        for h in range(heads_per_group):
            sl = slice(h * D, (h + 1) * D)
            inv = pl.reciprocal(l_sc[h], approx=False)   # exact (correctness review)
            acc_sc[:, sl] = acc_sc[:, sl] * inv
        o_ref[0] = acc_sc[...].astype(o_ref.dtype)


def _pallas_msa(x, bias, *, num_heads, head_dim, scale, mxu_dtype=None,
                max_kv_tile=512):
    """x: (B, S, 3*H*D); bias: (H, S, S) bf16 or None -> out: (B, S, H*D)."""
    B, S, C = x.shape
    H, D = num_heads, head_dim
    assert C == 3 * H * D
    G = _pick_head_group(H, D)            # heads per grid step
    HG = H // G                           # number of head groups
    GW = G * D                            # group channel width
    Tk = _pick_kv_tile(S, max_kv_tile)    # kv tile length
    KT = S // Tk
    has_bias = bias is not None
    cdt = jnp.dtype(mxu_dtype) if mxu_dtype is not None else x.dtype

    kernel = functools.partial(
        _msa_kernel, heads_per_group=G, head_dim=D, scale=scale,
        has_bias=has_bias, mxu_dtype=cdt)

    if GW % 128 == 0:
        # zero-copy q/k/v views: x passed three times; the channel offsets
        # (g*G*D, H*D + g*G*D, 2*H*D + g*G*D) are expressed as block indices.
        q_spec = pl.BlockSpec((1, S, GW), lambda g, b, t: (b, 0, g))
        k_spec = pl.BlockSpec((1, Tk, GW), lambda g, b, t: (b, t, HG + g))
        v_spec = pl.BlockSpec((1, Tk, GW), lambda g, b, t: (b, t, 2 * HG + g))
        qkv = (x, x, x)
    else:
        # head_dim not 128-friendly: one cheap host-side channel split so every
        # kernel block's last dim equals the full array dim (lane-legal).
        q_spec = pl.BlockSpec((1, S, GW), lambda g, b, t: (b, 0, g))
        k_spec = pl.BlockSpec((1, Tk, GW), lambda g, b, t: (b, t, g))
        v_spec = pl.BlockSpec((1, Tk, GW), lambda g, b, t: (b, t, g))
        qkv = (x[:, :, :H * D], x[:, :, H * D:2 * H * D], x[:, :, 2 * H * D:])

    in_specs = [q_spec, k_spec, v_spec]
    args = list(qkv)
    if has_bias:
        # TODO(synk): when KT == 1 the bias block is grid-invariant per head group;
        #             pinning it to a single buffer (pipeline_mode=pl.Buffered(1))
        #             would halve its VMEM footprint.
        in_specs.append(pl.BlockSpec((G, S, Tk), lambda g, b, t: (g, 0, t)))
        args.append(bias)

    # explicit VMEM budget: double-buffered q/k/v + out blocks, bias block, scratch
    itemsize = jnp.dtype(x.dtype).itemsize
    need = 2 * (S * GW + 2 * Tk * GW) * itemsize          # q, k, v blocks
    need += 2 * S * GW * itemsize                         # output block
    if has_bias:
        need += 2 * G * S * Tk * jnp.dtype(bias.dtype).itemsize
    need += (S * GW + 2 * G * S * 128) * 4                # f32 scratch (acc, m, l w/ lane pad)
    vmem_limit = int(min(max(need * 3 // 2 + (2 << 20), 16 << 20), 128 << 20))

    return pl.pallas_call(
        kernel,
        out_shape=jax.ShapeDtypeStruct((B, S, H * D), x.dtype),
        grid=(HG, B, KT),
        in_specs=in_specs,
        out_specs=pl.BlockSpec((1, S, GW), lambda g, b, t: (b, 0, g)),
        scratch_shapes=[
            pltpu.VMEM((G, S, 1), jnp.float32),   # running row max (per head)
            pltpu.VMEM((G, S, 1), jnp.float32),   # running row sum (per head)
            pltpu.VMEM((S, GW), jnp.float32),     # output accumulator
        ],
        compiler_params=pltpu.CompilerParams(
            dimension_semantics=("parallel", "parallel", "arbitrary"),
            vmem_limit_bytes=vmem_limit),
    )(*args)


# --------------------------------------------------------------------------
# MSA module (JAX / Pallas port)
# --------------------------------------------------------------------------
class MSAPallas:
    def __init__(self, rel_type, num_heads=32, partition_size=(1, 1),
                 attn_drop=0.0, rel=True, *, key=None, mxu_dtype=None,
                 max_kv_tile=512):
        assert attn_drop == 0.0  # TODO(synk): dropout not modeled (p=0.0 default)
        self.rel_type = rel_type
        self.rel = rel
        self.num_heads = num_heads
        self.partition_size = partition_size
        # NOTE: matches the PyTorch module exactly (num_heads, not head_dim, scaling)
        self.scale = num_heads ** (-0.5)
        self.attn_area = partition_size[0] * partition_size[1]
        self.mxu_dtype = mxu_dtype          # None -> native x dtype on the MXU
        self.max_kv_tile = max_kv_tile

        if rel:
            if key is None:
                key = jax.random.PRNGKey(42)
            if rel_type in (1, 3):
                shape = (2 * partition_size[0] - 1, num_heads)
            elif rel_type in (2, 4):
                shape = (2 * partition_size[0] - 1,
                         partition_size[1], partition_size[1], num_heads)
            else:
                raise ValueError
            # deterministic trunc_normal(std=0.02)-style init
            self.relative_position_bias_table = 0.02 * jax.random.truncated_normal(
                key, -2.0, 2.0, shape, jnp.float32)
            self.relative_position_index = get_relative_position_index_1d(
                partition_size[0])

    def _get_relative_positional_bias(self):
        """Returns bias of shape (H, attn_area, attn_area) in float32."""
        T, P1 = self.partition_size
        H = self.num_heads
        idx = self.relative_position_index.reshape(-1)                 # (T*T,)
        gathered = self.relative_position_bias_table[idx]              # gather dim 0

        if self.rel_type in (1, 3):
            # equivalent to PyTorch's unsqueeze/repeat/view:
            # bias[a, b, h] = b3[a % T, b % T, h]
            b3 = gathered.reshape(T, T, H)
            bias = jnp.tile(b3, (P1, P1, 1))                           # (A, A, H)
        else:  # 2 | 4
            b5 = gathered.reshape(T, T, P1, P1, H)
            b5 = jnp.transpose(b5, (0, 2, 1, 3, 4))                    # (T,P1,T,P1,H)
            bias = b5.reshape(self.attn_area, self.attn_area, H)       # (A, A, H)

        return jnp.transpose(bias, (2, 0, 1)).astype(jnp.float32)      # (H, A, A)

    def __call__(self, x):
        B_, S, C = x.shape
        H = self.num_heads
        D = C // (3 * H)

        bias = None
        if self.rel:
            # bf16 bias: halves the dominant VMEM resident and its HBM DMA;
            # upcast to f32 happens at the add inside the kernel.
            bias = self._get_relative_positional_bias().astype(jnp.bfloat16)
        # when rel=False no bias input / bias add is compiled at all.
        return _pallas_msa(x, bias, num_heads=H, head_dim=D, scale=self.scale,
                           mxu_dtype=self.mxu_dtype, max_kv_tile=self.max_kv_tile)

    # pure-JAX reference for verification
    def reference(self, x):
        B_, S, C = x.shape
        H = self.num_heads
        D = C // (3 * H)
        xf = x.astype(jnp.float32)
        qkv = xf.reshape(B_, S, 3, H, D).transpose(2, 0, 3, 1, 4)
        q, k, v = qkv[0], qkv[1], qkv[2]
        dots = jnp.einsum('bhsd,bhtd->bhst', q, k) * self.scale
        if self.rel:
            dots = dots + self._get_relative_positional_bias()[None]
        coef = jax.nn.softmax(dots, axis=-1)
        attn = jnp.einsum('bhst,bhtd->bhsd', coef, v)
        return attn.transpose(0, 2, 1, 3).reshape(B_, S, H * D)


# --------------------------------------------------------------------------
if __name__ == "__main__":
    root = jax.random.PRNGKey(0)
    k1, k2, k3, k4, k5 = jax.random.split(root, 5)

    def check(name, msa, x, atol, rtol):
        out = jax.block_until_ready(msa(x))
        ref = msa.reference(x)
        assert out.shape == ref.shape, (name, out.shape, ref.shape)
        out32 = out.astype(jnp.float32)
        err = float(jnp.max(jnp.abs(out32 - ref)))
        assert jnp.allclose(out32, ref, atol=atol, rtol=rtol), (name, err)

    # (A) head_dim=8 -> no 128-aligned head group exists: fallback full-width path
    H, P = 4, (4, 2)
    S, C = P[0] * P[1], 3 * 4 * 8
    xA = jax.random.normal(k1, (2, S, C), jnp.float32)
    msaA = MSAPallas(rel_type=2, num_heads=H, partition_size=P, rel=True, key=k2)
    check("A", msaA, xA, 1e-2, 1e-2)

    # (B) head_dim=32, 8 heads -> G=4 (128-wide zero-copy slabs), 2 head groups
    H, P = 8, (4, 2)
    S, C = P[0] * P[1], 3 * 8 * 32
    xB = jax.random.normal(k3, (2, S, C), jnp.float32)
    msaB = MSAPallas(rel_type=1, num_heads=H, partition_size=P, rel=True, key=k4)
    check("B", msaB, xB, 1e-2, 1e-2)

    # (C) S=256 with max_kv_tile=128 -> 2 KV steps (online softmax across tiles);
    #     rel=False -> no bias input / no bias add compiled in.
    H, P = 4, (16, 16)
    S, C = P[0] * P[1], 3 * 4 * 32
    xC = jax.random.normal(k5, (1, S, C), jnp.float32)
    msaC = MSAPallas(rel_type=1, num_heads=H, partition_size=P, rel=False,
                     max_kv_tile=128)
    check("C", msaC, xC, 1e-2, 1e-2)

    # (D) bf16 x end-to-end (the v5e MXU path), looser tolerance vs the f32 reference
    check("D", msaA, xA.astype(jnp.bfloat16), 5e-2, 5e-2)

    print("KERNEL_OK")
</pallas_src>

<mosaic_0001>
module attributes {stable_mosaic.version = 11 : i64} {
  func.func @_msa_kernel(%arg0: i32, %arg1: i32, %arg2: i32, %arg3: memref<1x8x32xf32, #tpu.memory_space<vmem>>, %arg4: memref<1x8x32xf32, #tpu.memory_space<vmem>>, %arg5: memref<1x8x32xf32, #tpu.memory_space<vmem>>, %arg6: memref<4x8x8xbf16, #tpu.memory_space<vmem>>, %arg7: memref<1x8x32xf32, #tpu.memory_space<vmem>>, %arg8: memref<4x8x1xf32, #tpu.memory_space<vmem>>, %arg9: memref<4x8x1xf32, #tpu.memory_space<vmem>>, %arg10: memref<8x32xf32, #tpu.memory_space<vmem>>) attributes {dimension_semantics = [#tpu.dimension_semantics<parallel>, #tpu.dimension_semantics<parallel>, #tpu.dimension_semantics<arbitrary>], iteration_bounds = array<i64: 1, 2, 1>, scalar_prefetch = 0 : i64, scratch_operands = 3 : i64, tpu.core_type = #tpu.core_type<tc>, window_params = [{transform_indices = @transform_0, window_bounds = array<i64: 1, 8, 32>}, {transform_indices = @transform_1, window_bounds = array<i64: 1, 8, 32>}, {transform_indices = @transform_2, window_bounds = array<i64: 1, 8, 32>}, {transform_indices = @transform_3, window_bounds = array<i64: 4, 8, 8>}, {transform_indices = @transform_4, window_bounds = array<i64: 1, 8, 32>}]} {
    %c0_i32 = arith.constant 0 : i32
    %0 = arith.cmpi eq, %arg2, %c0_i32 : i32
    %1 = arith.extui %0 : i1 to i32
    %c0_i32_0 = arith.constant 0 : i32
    %2 = arith.cmpi ne, %1, %c0_i32_0 : i32
    scf.if %2 {
      %cst_127 = arith.constant 0xFF800000 : f32
      %170 = vector.broadcast %cst_127 : f32 to vector<4x8x1xf32>
      %c0_128 = arith.constant 0 : index
      %c0_129 = arith.constant 0 : index
      %c0_130 = arith.constant 0 : index
      %171 = vector.load %arg8[%c0_128, %c0_129, %c0_130] : memref<4x8x1xf32, #tpu.memory_space<vmem>>, vector<4x8x1xf32>
      tpu.vector_store %arg8[%c0_128, %c0_129, %c0_130], %170 {strides = array<i32>} : memref<4x8x1xf32, #tpu.memory_space<vmem>>, vector<4x8x1xf32>,
      %cst_131 = arith.constant 0.000000e+00 : f32
      %172 = vector.broadcast %cst_131 : f32 to vector<4x8x1xf32>
      %c0_132 = arith.constant 0 : index
      %c0_133 = arith.constant 0 : index
      %c0_134 = arith.constant 0 : index
      %173 = vector.load %arg9[%c0_132, %c0_133, %c0_134] : memref<4x8x1xf32, #tpu.memory_space<vmem>>, vector<4x8x1xf32>
      tpu.vector_store %arg9[%c0_132, %c0_133, %c0_134], %172 {strides = array<i32>} : memref<4x8x1xf32, #tpu.memory_space<vmem>>, vector<4x8x1xf32>,
      %cst_135 = arith.constant 0.000000e+00 : f32
      %174 = vector.broadcast %cst_135 : f32 to vector<8x32xf32>
      %c0_136 = arith.constant 0 : index
      %c0_137 = arith.constant 0 : index
      %175 = vector.load %arg10[%c0_136, %c0_137] : memref<8x32xf32, #tpu.memory_space<vmem>>, vector<8x32xf32>
      tpu.vector_store %arg10[%c0_136, %c0_137], %174 {strides = array<i32>} : memref<8x32xf32, #tpu.memory_space<vmem>>, vector<8x32xf32>,
    } else {
    }
    %c0 = arith.constant 0 : index
    %c0_1 = arith.constant 0 : index
    %c0_2 = arith.constant 0 : index
    %3 = vector.load %arg3[%c0, %c0_1, %c0_2] : memref<1x8x32xf32, #tpu.memory_space<vmem>>, vector<1x8x8xf32>
    %4 = vector.shape_cast %3 : vector<1x8x8xf32> to vector<8x8xf32>
    %c0_3 = arith.constant 0 : index
    %c0_4 = arith.constant 0 : index
    %c0_5 = arith.constant 0 : index
    %5 = vector.load %arg4[%c0_3, %c0_4, %c0_5] : memref<1x8x32xf32, #tpu.memory_space<vmem>>, vector<1x8x8xf32>
    %6 = vector.shape_cast %5 : vector<1x8x8xf32> to vector<8x8xf32>
    %c0_6 = arith.constant 0 : index
    %c0_7 = arith.constant 0 : index
    %c0_8 = arith.constant 0 : index
    %7 = vector.load %arg5[%c0_6, %c0_7, %c0_8] : memref<1x8x32xf32, #tpu.memory_space<vmem>>, vector<1x8x8xf32>
    %8 = vector.shape_cast %7 : vector<1x8x8xf32> to vector<8x8xf32>
    %cst = arith.constant 5.000000e-01 : f32
    %9 = vector.broadcast %cst : f32 to vector<8x8xf32>
    %10 = arith.mulf %4, %9 : vector<8x8xf32>
    %cst_9 = arith.constant dense<0.000000e+00> : vector<8x8xf32>
    %11 = tpu.matmul %10, %6, %cst_9 {dimension_numbers = #tpu.dot_dimension_numbers<[1], [1], [0], [0], [0, 0, 1, 0], [], []>} : vector<8x8xf32>, vector<8x8xf32>, vector<8x8xf32> -> vector<8x8xf32>
    %c0_10 = arith.constant 0 : index
    %c0_11 = arith.constant 0 : index
    %c0_12 = arith.constant 0 : index
    %12 = vector.load %arg6[%c0_10, %c0_11, %c0_12] : memref<4x8x8xbf16, #tpu.memory_space<vmem>>, vector<1x8x8xbf16>
    %13 = vector.shape_cast %12 : vector<1x8x8xbf16> to vector<8x8xbf16>
    %14 = arith.extf %13 : vector<8x8xbf16> to vector<8x8xf32>
    %15 = arith.addf %11, %14 : vector<8x8xf32>
    %c0_13 = arith.constant 0 : index
    %c0_14 = arith.constant 0 : index
    %c0_15 = arith.constant 0 : index
    %16 = vector.load %arg8[%c0_13, %c0_14, %c0_15] : memref<4x8x1xf32, #tpu.memory_space<vmem>>, vector<1x8x1xf32>
    %17 = vector.shape_cast %16 : vector<1x8x1xf32> to vector<8x1xf32>
    %cst_16 = arith.constant dense<0xFF800000> : vector<8xf32>
    %18 = vector.multi_reduction <maximumf>, %15, %cst_16 [1] : vector<8x8xf32> to vector<8xf32>
    %19 = vector.shape_cast %18 : vector<8xf32> to vector<8x1xf32>
    %20 = arith.maximumf %17, %19 : vector<8x1xf32>
    %21 = arith.subf %17, %20 : vector<8x1xf32>
    %22 = math.exp %21 : vector<8x1xf32>
    %23 = vector.broadcast %20 : vector<8x1xf32> to vector<8x8xf32>
    %24 = arith.subf %15, %23 : vector<8x8xf32>
    %25 = math.exp %24 : vector<8x8xf32>
    %c0_17 = arith.constant 0 : index
    %c0_18 = arith.constant 0 : index
    %c0_19 = arith.constant 0 : index
    %26 = vector.load %arg9[%c0_17, %c0_18, %c0_19] : memref<4x8x1xf32, #tpu.memory_space<vmem>>, vector<1x8x1xf32>
    %27 = vector.shape_cast %26 : vector<1x8x1xf32> to vector<8x1xf32>
    %28 = arith.mulf %22, %27 : vector<8x1xf32>
    %cst_20 = arith.constant dense<0.000000e+00> : vector<8xf32>
    %29 = vector.multi_reduction <add>, %25, %cst_20 [1] : vector<8x8xf32> to vector<8xf32>
    %30 = vector.shape_cast %29 : vector<8xf32> to vector<8x1xf32>
    %31 = arith.addf %28, %30 : vector<8x1xf32>
    %c0_21 = arith.constant 0 : index
    %c0_22 = arith.constant 0 : index
    %c0_23 = arith.constant 0 : index
    %32 = vector.load %arg9[%c0_21, %c0_22, %c0_23] : memref<4x8x1xf32, #tpu.memory_space<vmem>>, vector<1x8x1xf32>
    %33 = vector.shape_cast %32 : vector<1x8x1xf32> to vector<8x1xf32>
    %34 = vector.shape_cast %31 : vector<8x1xf32> to vector<1x8x1xf32>
    tpu.vector_store %arg9[%c0_21, %c0_22, %c0_23], %34 {strides = array<i32>} : memref<4x8x1xf32, #tpu.memory_space<vmem>>, vector<1x8x1xf32>,
    %cst_24 = arith.constant dense<0.000000e+00> : vector<8x8xf32>
    %35 = tpu.matmul %25, %8, %cst_24 {dimension_numbers = #tpu.dot_dimension_numbers<[1], [0], [0], [1], [0, 0, 1, 1], [], []>} : vector<8x8xf32>, vector<8x8xf32>, vector<8x8xf32> -> vector<8x8xf32>
    %c0_25 = arith.constant 0 : index
    %c0_26 = arith.constant 0 : index
    %36 = vector.load %arg10[%c0_25, %c0_26] : memref<8x32xf32, #tpu.memory_space<vmem>>, vector<8x8xf32>
    %37 = vector.broadcast %22 : vector<8x1xf32> to vector<8x8xf32>
    %38 = arith.mulf %37, %36 : vector<8x8xf32>
    %39 = arith.addf %38, %35 : vector<8x8xf32>
    %c0_27 = arith.constant 0 : index
    %c0_28 = arith.constant 0 : index
    %40 = vector.load %arg10[%c0_27, %c0_28] : memref<8x32xf32, #tpu.memory_space<vmem>>, vector<8x8xf32>
    tpu.vector_store %arg10[%c0_27, %c0_28], %39 {strides = array<i32>} : memref<8x32xf32, #tpu.memory_space<vmem>>, vector<8x8xf32>,
    %c0_29 = arith.constant 0 : index
    %c0_30 = arith.constant 0 : index
    %c0_31 = arith.constant 0 : index
    %41 = vector.load %arg8[%c0_29, %c0_30, %c0_31] : memref<4x8x1xf32, #tpu.memory_space<vmem>>, vector<1x8x1xf32>
    %42 = vector.shape_cast %41 : vector<1x8x1xf32> to vector<8x1xf32>
    %43 = vector.shape_cast %20 : vector<8x1xf32> to vector<1x8x1xf32>
    tpu.vector_store %arg8[%c0_29, %c0_30, %c0_31], %43 {strides = array<i32>} : memref<4x8x1xf32, #tpu.memory_space<vmem>>, vector<1x8x1xf32>,
    %c0_32 = arith.constant 0 : index
    %c0_33 = arith.constant 0 : index
    %c8 = arith.constant 8 : index
    %44 = vector.load %arg3[%c0_32, %c0_33, %c8] : memref<1x8x32xf32, #tpu.memory_space<vmem>>, vector<1x8x8xf32>
    %45 = vector.shape_cast %44 : vector<1x8x8xf32> to vector<8x8xf32>
    %c0_34 = arith.constant 0 : index
    %c0_35 = arith.constant 0 : index
    %c8_36 = arith.constant 8 : index
    %46 = vector.load %arg4[%c0_34, %c0_35, %c8_36] : memref<1x8x32xf32, #tpu.memory_space<vmem>>, vector<1x8x8xf32>
    %47 = vector.shape_cast %46 : vector<1x8x8xf32> to vector<8x8xf32>
    %c0_37 = arith.constant 0 : index
    %c0_38 = arith.constant 0 : index
    %c8_39 = arith.constant 8 : index
    %48 = vector.load %arg5[%c0_37, %c0_38, %c8_39] : memref<1x8x32xf32, #tpu.memory_space<vmem>>, vector<1x8x8xf32>
    %49 = vector.shape_cast %48 : vector<1x8x8xf32> to vector<8x8xf32>
    %cst_40 = arith.constant 5.000000e-01 : f32
    %50 = vector.broadcast %cst_40 : f32 to vector<8x8xf32>
    %51 = arith.mulf %45, %50 : vector<8x8xf32>
    %cst_41 = arith.constant dense<0.000000e+00> : vector<8x8xf32>
    %52 = tpu.matmul %51, %47, %cst_41 {dimension_numbers = #tpu.dot_dimension_numbers<[1], [1], [0], [0], [0, 0, 1, 0], [], []>} : vector<8x8xf32>, vector<8x8xf32>, vector<8x8xf32> -> vector<8x8xf32>
    %c1 = arith.constant 1 : index
    %c0_42 = arith.constant 0 : index
    %c0_43 = arith.constant 0 : index
    %53 = vector.load %arg6[%c1, %c0_42, %c0_43] : memref<4x8x8xbf16, #tpu.memory_space<vmem>>, vector<1x8x8xbf16>
    %54 = vector.shape_cast %53 : vector<1x8x8xbf16> to vector<8x8xbf16>
    %55 = arith.extf %54 : vector<8x8xbf16> to vector<8x8xf32>
    %56 = arith.addf %52, %55 : vector<8x8xf32>
    %c1_44 = arith.constant 1 : index
    %c0_45 = arith.constant 0 : index
    %c0_46 = arith.constant 0 : index
    %57 = vector.load %arg8[%c1_44, %c0_45, %c0_46] : memref<4x8x1xf32, #tpu.memory_space<vmem>>, vector<1x8x1xf32>
    %58 = vector.shape_cast %57 : vector<1x8x1xf32> to vector<8x1xf32>
    %cst_47 = arith.constant dense<0xFF800000> : vector<8xf32>
    %59 = vector.multi_reduction <maximumf>, %56, %cst_47 [1] : vector<8x8xf32> to vector<8xf32>
    %60 = vector.shape_cast %59 : vector<8xf32> to vector<8x1xf32>
    %61 = arith.maximumf %58, %60 : vector<8x1xf32>
    %62 = arith.subf %58, %61 : vector<8x1xf32>
    %63 = math.exp %62 : vector<8x1xf32>
    %64 = vector.broadcast %61 : vector<8x1xf32> to vector<8x8xf32>
    %65 = arith.subf %56, %64 : vector<8x8xf32>
    %66 = math.exp %65 : vector<8x8xf32>
    %c1_48 = arith.constant 1 : index
    %c0_49 = arith.constant 0 : index
    %c0_50 = arith.constant 0 : index
    %67 = vector.load %arg9[%c1_48, %c0_49, %c0_50] : memref<4x8x1xf32, #tpu.memory_space<vmem>>, vector<1x8x1xf32>
    %68 = vector.shape_cast %67 : vector<1x8x1xf32> to vector<8x1xf32>
    %69 = arith.mulf %63, %68 : vector<8x1xf32>
    %cst_51 = arith.constant dense<0.000000e+00> : vector<8xf32>
    %70 = vector.multi_reduction <add>, %66, %cst_51 [1] : vector<8x8xf32> to vector<8xf32>
    %71 = vector.shape_cast %70 : vector<8xf32> to vector<8x1xf32>
    %72 = arith.addf %69, %71 : vector<8x1xf32>
    %c1_52 = arith.constant 1 : index
    %c0_53 = arith.constant 0 : index
    %c0_54 = arith.constant 0 : index
    %73 = vector.load %arg9[%c1_52, %c0_53, %c0_54] : memref<4x8x1xf32, #tpu.memory_space<vmem>>, vector<1x8x1xf32>
    %74 = vector.shape_cast %73 : vector<1x8x1xf32> to vector<8x1xf32>
    %75 = vector.shape_cast %72 : vector<8x1xf32> to vector<1x8x1xf32>
    tpu.vector_store %arg9[%c1_52, %c0_53, %c0_54], %75 {strides = array<i32>} : memref<4x8x1xf32, #tpu.memory_space<vmem>>, vector<1x8x1xf32>,
    %cst_55 = arith.constant dense<0.000000e+00> : vector<8x8xf32>
    %76 = tpu.matmul %66, %49, %cst_55 {dimension_numbers = #tpu.dot_dimension_numbers<[1], [0], [0], [1], [0, 0, 1, 1], [], []>} : vector<8x8xf32>, vector<8x8xf32>, vector<8x8xf32> -> vector<8x8xf32>
    %c0_56 = arith.constant 0 : index
    %c8_57 = arith.constant 8 : index
    %77 = vector.load %arg10[%c0_56, %c8_57] : memref<8x32xf32, #tpu.memory_space<vmem>>, vector<8x8xf32>
    %78 = vector.broadcast %63 : vector<8x1xf32> to vector<8x8xf32>
    %79 = arith.mulf %78, %77 : vector<8x8xf32>
    %80 = arith.addf %79, %76 : vector<8x8xf32>
    %c0_58 = arith.constant 0 : index
    %c8_59 = arith.constant 8 : index
    %81 = vector.load %arg10[%c0_58, %c8_59] : memref<8x32xf32, #tpu.memory_space<vmem>>, vector<8x8xf32>
    tpu.vector_store %arg10[%c0_58, %c8_59], %80 {strides = array<i32>} : memref<8x32xf32, #tpu.memory_space<vmem>>, vector<8x8xf32>,
    %c1_60 = arith.constant 1 : index
    %c0_61 = arith.constant 0 : index
    %c0_62 = arith.constant 0 : index
    %82 = vector.load %arg8[%c1_60, %c0_61, %c0_62] : memref<4x8x1xf32, #tpu.memory_space<vmem>>, vector<1x8x1xf32>
    %83 = vector.shape_cast %82 : vector<1x8x1xf32> to vector<8x1xf32>
    %84 = vector.shape_cast %61 : vector<8x1xf32> to vector<1x8x1xf32>
    tpu.vector_store %arg8[%c1_60, %c0_61, %c0_62], %84 {strides = array<i32>} : memref<4x8x1xf32, #tpu.memory_space<vmem>>, vector<1x8x1xf32>,
    %c0_63 = arith.constant 0 : index
    %c0_64 = arith.constant 0 : index
    %c16 = arith.constant 16 : index
    %85 = vector.load %arg3[%c0_63, %c0_64, %c16] : memref<1x8x32xf32, #tpu.memory_space<vmem>>, vector<1x8x8xf32>
    %86 = vector.shape_cast %85 : vector<1x8x8xf32> to vector<8x8xf32>
    %c0_65 = arith.constant 0 : index
    %c0_66 = arith.constant 0 : index
    %c16_67 = arith.constant 16 : index
    %87 = vector.load %arg4[%c0_65, %c0_66, %c16_67] : memref<1x8x32xf32, #tpu.memory_space<vmem>>, vector<1x8x8xf32>
    %88 = vector.shape_cast %87 : vector<1x8x8xf32> to vector<8x8xf32>
    %c0_68 = arith.constant 0 : index
    %c0_69 = arith.constant 0 : index
    %c16_70 = arith.constant 16 : index
    %89 = vector.load %arg5[%c0_68, %c0_69, %c16_70] : memref<1x8x32xf32, #tpu.memory_space<vmem>>, vector<1x8x8xf32>
    %90 = vector.shape_cast %89 : vector<1x8x8xf32> to vector<8x8xf32>
    %cst_71 = arith.constant 5.000000e-01 : f32
    %91 = vector.broadcast %cst_71 : f32 to vector<8x8xf32>
    %92 = arith.mulf %86, %91 : vector<8x8xf32>
    %cst_72 = arith.constant dense<0.000000e+00> : vector<8x8xf32>
    %93 = tpu.matmul %92, %88, %cst_72 {dimension_numbers = #tpu.dot_dimension_numbers<[1], [1], [0], [0], [0, 0, 1, 0], [], []>} : vector<8x8xf32>, vector<8x8xf32>, vector<8x8xf32> -> vector<8x8xf32>
    %c2 = arith.constant 2 : index
    %c0_73 = arith.constant 0 : index
    %c0_74 = arith.constant 0 : index
    %94 = vector.load %arg6[%c2, %c0_73, %c0_74] : memref<4x8x8xbf16, #tpu.memory_space<vmem>>, vector<1x8x8xbf16>
    %95 = vector.shape_cast %94 : vector<1x8x8xbf16> to vector<8x8xbf16>
    %96 = arith.extf %95 : vector<8x8xbf16> to vector<8x8xf32>
    %97 = arith.addf %93, %96 : vector<8x8xf32>
    %c2_75 = arith.constant 2 : index
    %c0_76 = arith.constant 0 : index
    %c0_77 = arith.constant 0 : index
    %98 = vector.load %arg8[%c2_75, %c0_76, %c0_77] : memref<4x8x1xf32, #tpu.memory_space<vmem>>, vector<1x8x1xf32>
    %99 = vector.shape_cast %98 : vector<1x8x1xf32> to vector<8x1xf32>
    %cst_78 = arith.constant dense<0xFF800000> : vector<8xf32>
    %100 = vector.multi_reduction <maximumf>, %97, %cst_78 [1] : vector<8x8xf32> to vector<8xf32>
    %101 = vector.shape_cast %100 : vector<8xf32> to vector<8x1xf32>
    %102 = arith.maximumf %99, %101 : vector<8x1xf32>
    %103 = arith.subf %99, %102 : vector<8x1xf32>
    %104 = math.exp %103 : vector<8x1xf32>
    %105 = vector.broadcast %102 : vector<8x1xf32> to vector<8x8xf32>
    %106 = arith.subf %97, %105 : vector<8x8xf32>
    %107 = math.exp %106 : vector<8x8xf32>
    %c2_79 = arith.constant 2 : index
    %c0_80 = arith.constant 0 : index
    %c0_81 = arith.constant 0 : index
    %108 = vector.load %arg9[%c2_79, %c0_80, %c0_81] : memref<4x8x1xf32, #tpu.memory_space<vmem>>, vector<1x8x1xf32>
    %109 = vector.shape_cast %108 : vector<1x8x1xf32> to vector<8x1xf32>
    %110 = arith.mulf %104, %109 : vector<8x1xf32>
    %cst_82 = arith.constant dense<0.000000e+00> : vector<8xf32>
    %111 = vector.multi_reduction <add>, %107, %cst_82 [1] : vector<8x8xf32> to vector<8xf32>
    %112 = vector.shape_cast %111 : vector<8xf32> to vector<8x1xf32>
    %113 = arith.addf %110, %112 : vector<8x1xf32>
    %c2_83 = arith.constant 2 : index
    %c0_84 = arith.constant 0 : index
    %c0_85 = arith.constant 0 : index
    %114 = vector.load %arg9[%c2_83, %c0_84, %c0_85] : memref<4x8x1xf32, #tpu.memory_space<vmem>>, vector<1x8x1xf32>
    %115 = vector.shape_cast %114 : vector<1x8x1xf32> to vector<8x1xf32>
    %116 = vector.shape_cast %113 : vector<8x1xf32> to vector<1x8x1xf32>
    tpu.vector_store %arg9[%c2_83, %c0_84, %c0_85], %116 {strides = array<i32>} : memref<4x8x1xf32, #tpu.memory_space<vmem>>, vector<1x8x1xf32>,
    %cst_86 = arith.constant dense<0.000000e+00> : vector<8x8xf32>
    %117 = tpu.matmul %107, %90, %cst_86 {dimension_numbers = #tpu.dot_dimension_numbers<[1], [0], [0], [1], [0, 0, 1, 1], [], []>} : vector<8x8xf32>, vector<8x8xf32>, vector<8x8xf32> -> vector<8x8xf32>
    %c0_87 = arith.constant 0 : index
    %c16_88 = arith.constant 16 : index
    %118 = vector.load %arg10[%c0_87, %c16_88] : memref<8x32xf32, #tpu.memory_space<vmem>>, vector<8x8xf32>
    %119 = vector.broadcast %104 : vector<8x1xf32> to vector<8x8xf32>
    %120 = arith.mulf %119, %118 : vector<8x8xf32>
    %121 = arith.addf %120, %117 : vector<8x8xf32>
    %c0_89 = arith.constant 0 : index
    %c16_90 = arith.constant 16 : index
    %122 = vector.load %arg10[%c0_89, %c16_90] : memref<8x32xf32, #tpu.memory_space<vmem>>, vector<8x8xf32>
    tpu.vector_store %arg10[%c0_89, %c16_90], %121 {strides = array<i32>} : memref<8x32xf32, #tpu.memory_space<vmem>>, vector<8x8xf32>,
    %c2_91 = arith.constant 2 : index
    %c0_92 = arith.constant 0 : index
    %c0_93 = arith.constant 0 : index
    %123 = vector.load %arg8[%c2_91, %c0_92, %c0_93] : memref<4x8x1xf32, #tpu.memory_space<vmem>>, vector<1x8x1xf32>
    %124 = vector.shape_cast %123 : vector<1x8x1xf32> to vector<8x1xf32>
    %125 = vector.shape_cast %102 : vector<8x1xf32> to vector<1x8x1xf32>
    tpu.vector_store %arg8[%c2_91, %c0_92, %c0_93], %125 {strides = array<i32>} : memref<4x8x1xf32, #tpu.memory_space<vmem>>, vector<1x8x1xf32>,
    %c0_94 = arith.constant 0 : index
    %c0_95 = arith.constant 0 : index
    %c24 = arith.constant 24 : index
    %126 = vector.load %arg3[%c0_94, %c0_95, %c24] : memref<1x8x32xf32, #tpu.memory_space<vmem>>, vector<1x8x8xf32>
    %127 = vector.shape_cast %126 : vector<1x8x8xf32> to vector<8x8xf32>
    %c0_96 = arith.constant 0 : index
    %c0_97 = arith.constant 0 : index
    %c24_98 = arith.constant 24 : index
    %128 = vector.load %arg4[%c0_96, %c0_97, %c24_98] : memref<1x8x32xf32, #tpu.memory_space<vmem>>, vector<1x8x8xf32>
    %129 = vector.shape_cast %128 : vector<1x8x8xf32> to vector<8x8xf32>
    %c0_99 = arith.constant 0 : index
    %c0_100 = arith.constant 0 : index
    %c24_101 = arith.constant 24 : index
    %130 = vector.load %arg5[%c0_99, %c0_100, %c24_101] : memref<1x8x32xf32, #tpu.memory_space<vmem>>, vector<1x8x8xf32>
    %131 = vector.shape_cast %130 : vector<1x8x8xf32> to vector<8x8xf32>
    %cst_102 = arith.constant 5.000000e-01 : f32
    %132 = vector.broadcast %cst_102 : f32 to vector<8x8xf32>
    %133 = arith.mulf %127, %132 : vector<8x8xf32>
    %cst_103 = arith.constant dense<0.000000e+00> : vector<8x8xf32>
    %134 = tpu.matmul %133, %129, %cst_103 {dimension_numbers = #tpu.dot_dimension_numbers<[1], [1], [0], [0], [0, 0, 1, 0], [], []>} : vector<8x8xf32>, vector<8x8xf32>, vector<8x8xf32> -> vector<8x8xf32>
    %c3 = arith.constant 3 : index
    %c0_104 = arith.constant 0 : index
    %c0_105 = arith.constant 0 : index
    %135 = vector.load %arg6[%c3, %c0_104, %c0_105] : memref<4x8x8xbf16, #tpu.memory_space<vmem>>, vector<1x8x8xbf16>
    %136 = vector.shape_cast %135 : vector<1x8x8xbf16> to vector<8x8xbf16>
    %137 = arith.extf %136 : vector<8x8xbf16> to vector<8x8xf32>
    %138 = arith.addf %134, %137 : vector<8x8xf32>
    %c3_106 = arith.constant 3 : index
    %c0_107 = arith.constant 0 : index
    %c0_108 = arith.constant 0 : index
    %139 = vector.load %arg8[%c3_106, %c0_107, %c0_108] : memref<4x8x1xf32, #tpu.memory_space<vmem>>, vector<1x8x1xf32>
    %140 = vector.shape_cast %139 : vector<1x8x1xf32> to vector<8x1xf32>
    %cst_109 = arith.constant dense<0xFF800000> : vector<8xf32>
    %141 = vector.multi_reduction <maximumf>, %138, %cst_109 [1] : vector<8x8xf32> to vector<8xf32>
    %142 = vector.shape_cast %141 : vector<8xf32> to vector<8x1xf32>
    %143 = arith.maximumf %140, %142 : vector<8x1xf32>
    %144 = arith.subf %140, %143 : vector<8x1xf32>
    %145 = math.exp %144 : vector<8x1xf32>
    %146 = vector.broadcast %143 : vector<8x1xf32> to vector<8x8xf32>
    %147 = arith.subf %138, %146 : vector<8x8xf32>
    %148 = math.exp %147 : vector<8x8xf32>
    %c3_110 = arith.constant 3 : index
    %c0_111 = arith.constant 0 : index
    %c0_112 = arith.constant 0 : index
    %149 = vector.load %arg9[%c3_110, %c0_111, %c0_112] : memref<4x8x1xf32, #tpu.memory_space<vmem>>, vector<1x8x1xf32>
    %150 = vector.shape_cast %149 : vector<1x8x1xf32> to vector<8x1xf32>
    %151 = arith.mulf %145, %150 : vector<8x1xf32>
    %cst_113 = arith.constant dense<0.000000e+00> : vector<8xf32>
    %152 = vector.multi_reduction <add>, %148, %cst_113 [1] : vector<8x8xf32> to vector<8xf32>
    %153 = vector.shape_cast %152 : vector<8xf32> to vector<8x1xf32>
    %154 = arith.addf %151, %153 : vector<8x1xf32>
    %c3_114 = arith.constant 3 : index
    %c0_115 = arith.constant 0 : index
    %c0_116 = arith.constant 0 : index
    %155 = vector.load %arg9[%c3_114, %c0_115, %c0_116] : memref<4x8x1xf32, #tpu.memory_space<vmem>>, vector<1x8x1xf32>
    %156 = vector.shape_cast %155 : vector<1x8x1xf32> to vector<8x1xf32>
    %157 = vector.shape_cast %154 : vector<8x1xf32> to vector<1x8x1xf32>
    tpu.vector_store %arg9[%c3_114, %c0_115, %c0_116], %157 {strides = array<i32>} : memref<4x8x1xf32, #tpu.memory_space<vmem>>, vector<1x8x1xf32>,
    %cst_117 = arith.constant dense<0.000000e+00> : vector<8x8xf32>
    %158 = tpu.matmul %148, %131, %cst_117 {dimension_numbers = #tpu.dot_dimension_numbers<[1], [0], [0], [1], [0, 0, 1, 1], [], []>} : vector<8x8xf32>, vector<8x8xf32>, vector<8x8xf32> -> vector<8x8xf32>
    %c0_118 = arith.constant 0 : index
    %c24_119 = arith.constant 24 : index
    %159 = vector.load %arg10[%c0_118, %c24_119] : memref<8x32xf32, #tpu.memory_space<vmem>>, vector<8x8xf32>
    %160 = vector.broadcast %145 : vector<8x1xf32> to vector<8x8xf32>
    %161 = arith.mulf %160, %159 : vector<8x8xf32>
    %162 = arith.addf %161, %158 : vector<8x8xf32>
    %c0_120 = arith.constant 0 : index
    %c24_121 = arith.constant 24 : index
    %163 = vector.load %arg10[%c0_120, %c24_121] : memref<8x32xf32, #tpu.memory_space<vmem>>, vector<8x8xf32>
    tpu.vector_store %arg10[%c0_120, %c24_121], %162 {strides = array<i32>} : memref<8x32xf32, #tpu.memory_space<vmem>>, vector<8x8xf32>,
    %c3_122 = arith.constant 3 : index
    %c0_123 = arith.constant 0 : index
    %c0_124 = arith.constant 0 : index
    %164 = vector.load %arg8[%c3_122, %c0_123, %c0_124] : memref<4x8x1xf32, #tpu.memory_space<vmem>>, vector<1x8x1xf32>
    %165 = vector.shape_cast %164 : vector<1x8x1xf32> to vector<8x1xf32>
    %166 = vector.shape_cast %143 : vector<8x1xf32> to vector<1x8x1xf32>
    tpu.vector_store %arg8[%c3_122, %c0_123, %c0_124], %166 {strides = array<i32>} : memref<4x8x1xf32, #tpu.memory_space<vmem>>, vector<1x8x1xf32>,
    %c0_i32_125 = arith.constant 0 : i32
    %167 = arith.cmpi eq, %arg2, %c0_i32_125 : i32
    %168 = arith.extui %167 : i1 to i32
    %c0_i32_126 = arith.constant 0 : i32
    %169 = arith.cmpi ne, %168, %c0_i32_126 : i32
    scf.if %169 {
      %c0_127 = arith.constant 0 : index
      %c0_128 = arith.constant 0 : index
      %c0_129 = arith.constant 0 : index
      %170 = vector.load %arg9[%c0_127, %c0_128, %c0_129] : memref<4x8x1xf32, #tpu.memory_space<vmem>>, vector<1x8x1xf32>
      %171 = vector.shape_cast %170 : vector<1x8x1xf32> to vector<8x1xf32>
      %172 = tpu.reciprocal %171 : vector<8x1xf32> -> vector<8x1xf32>
      %c0_130 = arith.constant 0 : index
      %c0_131 = arith.constant 0 : index
      %173 = vector.load %arg10[%c0_130, %c0_131] : memref<8x32xf32, #tpu.memory_space<vmem>>, vector<8x8xf32>
      %174 = vector.broadcast %172 : vector<8x1xf32> to vector<8x8xf32>
      %175 = arith.mulf %173, %174 : vector<8x8xf32>
      %c0_132 = arith.constant 0 : index
      %c0_133 = arith.constant 0 : index
      %176 = vector.load %arg10[%c0_132, %c0_133] : memref<8x32xf32, #tpu.memory_space<vmem>>, vector<8x8xf32>
      tpu.vector_store %arg10[%c0_132, %c0_133], %175 {strides = array<i32>} : memref<8x32xf32, #tpu.memory_space<vmem>>, vector<8x8xf32>,
      %c1_134 = arith.constant 1 : index
      %c0_135 = arith.constant 0 : index
      %c0_136 = arith.constant 0 : index
      %177 = vector.load %arg9[%c1_134, %c0_135, %c0_136] : memref<4x8x1xf32, #tpu.memory_space<vmem>>, vector<1x8x1xf32>
      %178 = vector.shape_cast %177 : vector<1x8x1xf32> to vector<8x1xf32>
      %179 = tpu.reciprocal %178 : vector<8x1xf32> -> vector<8x1xf32>
      %c0_137 = arith.constant 0 : index
      %c8_138 = arith.constant 8 : index
      %180 = vector.load %arg10[%c0_137, %c8_138] : memref<8x32xf32, #tpu.memory_space<vmem>>, vector<8x8xf32>
      %181 = vector.broadcast %179 : vector<8x1xf32> to vector<8x8xf32>
      %182 = arith.mulf %180, %181 : vector<8x8xf32>
      %c0_139 = arith.constant 0 : index
      %c8_140 = arith.constant 8 : index
      %183 = vector.load %arg10[%c0_139, %c8_140] : memref<8x32xf32, #tpu.memory_space<vmem>>, vector<8x8xf32>
      tpu.vector_store %arg10[%c0_139, %c8_140], %182 {strides = array<i32>} : memref<8x32xf32, #tpu.memory_space<vmem>>, vector<8x8xf32>,
      %c2_141 = arith.constant 2 : index
      %c0_142 = arith.constant 0 : index
      %c0_143 = arith.constant 0 : index
      %184 = vector.load %arg9[%c2_141, %c0_142, %c0_143] : memref<4x8x1xf32, #tpu.memory_space<vmem>>, vector<1x8x1xf32>
      %185 = vector.shape_cast %184 : vector<1x8x1xf32> to vector<8x1xf32>
      %186 = tpu.reciprocal %185 : vector<8x1xf32> -> vector<8x1xf32>
      %c0_144 = arith.constant 0 : index
      %c16_145 = arith.constant 16 : index
      %187 = vector.load %arg10[%c0_144, %c16_145] : memref<8x32xf32, #tpu.memory_space<vmem>>, vector<8x8xf32>
      %188 = vector.broadcast %186 : vector<8x1xf32> to vector<8x8xf32>
      %189 = arith.mulf %187, %188 : vector<8x8xf32>
      %c0_146 = arith.constant 0 : index
      %c16_147 = arith.constant 16 : index
      %190 = vector.load %arg10[%c0_146, %c16_147] : memref<8x32xf32, #tpu.memory_space<vmem>>, vector<8x8xf32>
      tpu.vector_store %arg10[%c0_146, %c16_147], %189 {strides = array<i32>} : memref<8x32xf32, #tpu.memory_space<vmem>>, vector<8x8xf32>,
      %c3_148 = arith.constant 3 : index
      %c0_149 = arith.constant 0 : index
      %c0_150 = arith.constant 0 : index
      %191 = vector.load %arg9[%c3_148, %c0_149, %c0_150] : memref<4x8x1xf32, #tpu.memory_space<vmem>>, vector<1x8x1xf32>
      %192 = vector.shape_cast %191 : vector<1x8x1xf32> to vector<8x1xf32>
      %193 = tpu.reciprocal %192 : vector<8x1xf32> -> vector<8x1xf32>
      %c0_151 = arith.constant 0 : index
      %c24_152 = arith.constant 24 : index
      %194 = vector.load %arg10[%c0_151, %c24_152] : memref<8x32xf32, #tpu.memory_space<vmem>>, vector<8x8xf32>
      %195 = vector.broadcast %193 : vector<8x1xf32> to vector<8x8xf32>
      %196 = arith.mulf %194, %195 : vector<8x8xf32>
      %c0_153 = arith.constant 0 : index
      %c24_154 = arith.constant 24 : index
      %197 = vector.load %arg10[%c0_153, %c24_154] : memref<8x32xf32, #tpu.memory_space<vmem>>, vector<8x8xf32>
      tpu.vector_store %arg10[%c0_153, %c24_154], %196 {strides = array<i32>} : memref<8x32xf32, #tpu.memory_space<vmem>>, vector<8x8xf32>,
      %c0_155 = arith.constant 0 : index
      %c0_156 = arith.constant 0 : index
      %198 = vector.load %arg10[%c0_155, %c0_156] : memref<8x32xf32, #tpu.memory_space<vmem>>, vector<8x32xf32>
      %c0_157 = arith.constant 0 : index
      %c0_158 = arith.constant 0 : index
      %c0_159 = arith.constant 0 : index
      %199 = vector.load %arg7[%c0_157, %c0_158, %c0_159] : memref<1x8x32xf32, #tpu.memory_space<vmem>>, vector<1x8x32xf32>
      %200 = vector.shape_cast %199 : vector<1x8x32xf32> to vector<8x32xf32>
      %201 = vector.shape_cast %198 : vector<8x32xf32> to vector<1x8x32xf32>
      tpu.vector_store %arg7[%c0_157, %c0_158, %c0_159], %201 {strides = array<i32>} : memref<1x8x32xf32, #tpu.memory_space<vmem>>, vector<1x8x32xf32>,
    } else {
    }
    return
  }
  func.func @transform_0(%arg0: i32, %arg1: i32, %arg2: i32) -> (i32, i32, i32) {
    %c0_i32 = arith.constant 0 : i32
    %c0_i32_0 = arith.constant 0 : i32
    return %arg1, %c0_i32, %arg0 : i32, i32, i32
  }
  func.func @transform_1(%arg0: i32, %arg1: i32, %arg2: i32) -> (i32, i32, i32) {
    %c0_i32 = arith.constant 0 : i32
    return %arg1, %arg2, %arg0 : i32, i32, i32
  }
  func.func @transform_2(%arg0: i32, %arg1: i32, %arg2: i32) -> (i32, i32, i32) {
    %c0_i32 = arith.constant 0 : i32
    return %arg1, %arg2, %arg0 : i32, i32, i32
  }
  func.func @transform_3(%arg0: i32, %arg1: i32, %arg2: i32) -> (i32, i32, i32) {
    %c0_i32 = arith.constant 0 : i32
    %c0_i32_0 = arith.constant 0 : i32
    return %arg0, %c0_i32, %arg2 : i32, i32, i32
  }
  func.func @transform_4(%arg0: i32, %arg1: i32, %arg2: i32) -> (i32, i32, i32) {
    %c0_i32 = arith.constant 0 : i32
    %c0_i32_0 = arith.constant 0 : i32
    return %arg1, %c0_i32, %arg0 : i32, i32, i32
  }
}

</mosaic_0001>

<bundles_post_ra>
// kernel: tpu_custom_call.1
= control target key start
LH: loop header
LB: loop body
LE: loop exit
PB: predicated region body
PF: predicated region fallthrough
CT: control target
= control target key end

     0   :  { %s2151_s0 = inlined_call_operand.hbm [shape: f32[2,8,32], index: 0, kind: input, shape index: {}]   ;;  %s2152_s1 = inlined_call_operand.hbm [shape: f32[2,8,32], index: 1, kind: input, shape index: {}]   ;;  %s2153_s2 = inlined_call_operand.hbm [shape: f32[2,8,32], index: 2, kind: input, shape index: {}]   ;;  %s2154_s3 = inlined_call_operand.hbm [shape: bf16[4,8,8], index: 3, kind: input, shape index: {}]   ;;  %s2155_s4 = inlined_call_operand.hbm [shape: f32[2,8,32], index: 4, kind: output, shape index: {}]  }
   0x1   :  { %2161 = sst [smem:[#allocation21_spill]] %s2152_s1 }
   0x2   :  { %9 = vsyncpa [#allocation6], 0 }
   0x3   :  { %11 = vsyncpa [#allocation6 + $0x1], 0 }
   0x4   :  { %12 = vsyncpa [#allocation9], 0 }
   0x5   :  { %14 = vsyncpa [#allocation9 + $0x1], 0 }
   0x6   :  { %15 = vsyncpa [#allocation12], 0 }
   0x7   :  { %16 = vsyncpa [#allocation7], 0 }
   0x8   :  { %18 = vsyncpa [#allocation7 + $0x1], 0  ;;  %s1821_s15 = smov 0   ;;  %s1823_s16 = smov 0  }
   0x9   :  { %s1825_s17 = smov 0   ;;  %s1827_s18 = smov 0  }
   0xa   :  { %s1829_s19 = smov 0   ;;  %s1831_s20 = smov 0  }
   0xb LB: > { %2162 = sst [smem:[#allocation18_spill]] %s1773_s19  ;;  %s39_s21 = sadd.s32 1, %s1773_s19  ;;  %s1777_s20 = sphi %s1831_s20, %s24_s20   ;;  %s1773_s19 = sphi %s1829_s19, %s2181_s19   ;;  %s1769_s18 = sphi %s1827_s18, %s2180_s18   ;;  %s1765_s17 = sphi %s1825_s17, %s2184_s17   ;;  %s1761_s16 = sphi %s1823_s16, %s2183_s16   ;;  %s1757_s15 = sphi %s1821_s15, %s2182_s15  }
   0xc   : > { %s52_s22 = sadd.s32 1, %s1765_s17  ;;  %p41_p0 = scmp.ge.s32.totalorder %s39_s21, 2 }
   0xd   : > { %p59_p1 = scmp.ne.s32.totalorder %s1765_s17, %s1761_s16  ;;  %p60_p2 = scmp.eq.s32.totalorder %s1777_s20, 0 }
   0xe   : > { %s2186_s21 = smov (%p41_p0, %s39_s21), 0  ;;  %p1489_p5 = scmp.lt.s32.totalorder %s1777_s20, 2 }
   0xf   : > { %2163 = sst [smem:[#allocation19_spill]] %s2186_s21  ;;  %p61_p4 = por %p60_p2, %p59_p1 }
  0x10   : > { %s47_s23 = ssub.s32 %s1773_s19, %s2186_s21  ;;  %s2158_s24 = sand.u32 1, %s1765_s17  }
  0x11   : > { %p50_p6 = scmp.eq.s32.totalorder %s47_s23, 0  ;;  %s1868_s25 = sshll.u32 %s2158_s24, 3 }
  0x12   : > { %s1871_s26 = sshll.u32 %s1773_s19, 7  ;;  %p1873_p7 = pnand %p1489_p5, %p61_p4 }
  0x13   : > { %s1878_s28 = scalar_select %p50_p6, %s1765_s17, %s52_s22  }
  0x14   : > { %s241_s29 = sand.u32 1, %s1777_s20   ;;  %s2166_s1 = sld [smem:[#allocation21_spill]] }
  0x15   : > { %2165 = sst [smem:[#allocation20_spill]] %s1878_s28  ;;  %s245_s7 = scalar_lea.vmem [#allocation8], %s1868_s25 }
  0x16   : > { %s254_s8 = sshll.u32 %s245_s7, 4  ;;  %s1886_s9 = scalar_lea.sflag [#allocation9], %s241_s29  ;;  %s255_s8 = int_to_ptr.vmem [resolvable:$true] %s254_s8 }
  0x17   : > { %p2157_p8 = pneg %p1873_p7  ;;  %s1592_s10 = scalar_lea.vmem %s255_s8, 128 }
  0x18   : > { %p1593_p9 = scmp.ne.s32.totalorder %s255_s8, %s1592_s10  ;;  %s1779_s11 = smov [#allocation8]  }
  0x19   : > { %s1597_s12 = sshll.u32 %s1779_s11, 4  ;;  %s1598_s12 = int_to_ptr.vmem [resolvable:$false] %s1597_s12 }
  0x1a   : > { %s252_s6 = scalar_lea.hbm %s2166_s1, %s1871_s26  ;;  %p1595_p10 = pnand %p1593_p9, %p2157_p8 }
  0x1b   : > { %s1599_s13 = scalar_lea.vmem %s1598_s12, 256  ;;  %p1600_p12 = scmp.lt.s32.totalorder %s255_s8, %s1598_s12 }
  0x1c   : > { %p1596_p11 = pneg %p1595_p10  ;;  %p1601_p13 = scmp.lt.s32.totalorder %s1599_s13, %s1592_s10 }
  0x1e   : > { %p1602_p0 = por %p1601_p13, %p1600_p12 }
  0x20   : > { %p1603_p2 = pnand %p1602_p0, %p1596_p11 }
  0x22   : > { %1606 = shalt.err (!%p1603_p2)
}
  0x23   : > { %1480 = dma.hbm_to_vmem [thread:$0]  (!%p1873_p7), %s252_s6, 128, %s255_s8, %s1886_s9  }
  0x24   : > { %s1897_s14 = sadd.s32 4294967295, %s1777_s20   ;;  %s1370_s22 = sadd.s32 4294967294, %s1777_s20  }
  0x25   : > { %p65_p4 = scmp.ne.s32.totalorder %s1761_s16, %s1757_s15  ;;  %p2156_p5 = scmp.eq.s32.totalorder %s1897_s14, 0 }
  0x26   : > { %p179_p6 = scmp.eq.s32.totalorder %s1897_s14, 1  ;;  %p185_p9 = scmp.eq.s32.totalorder %s1370_s22, 1 }
  0x27   : > { %p1371_p10 = scmp.ge.s32.totalorder %s1777_s20, 1  ;;  %p1907_p11 = por %p2156_p5, %p65_p4 }
  0x28   : > { %p1914_p12 = por %p179_p6, %p59_p1  ;;  %p1918_p13 = por %p185_p9, %p65_p4 }
  0x29   : > { %p192_p0 = scmp.lt.s32.totalorder %s1777_s20, 3  ;;  %s1780_s6 = smov [#allocation11]  }
  0x2a   : > { %s208_s7 = sshll.u32 %s1780_s6, 4  ;;  %s226_s13 = scalar_lea.vmem [#allocation5], %s1868_s25  ;;  %s209_s7 = int_to_ptr.vmem [resolvable:$true] %s208_s7 }
  0x2b   : > { %p1923_p2 = pnand %p1371_p10, %p192_p0  ;;  %s234_s22 = sshll.u32 %s226_s13, 4  ;;  %s1940_s22 = int_to_ptr.vmem [resolvable:$true] %s234_s22 }
  0x2c   : > { %s1618_s6 = scalar_lea.vmem %s209_s7, 256  ;;  %p1626_p0 = scmp.lt.s32.totalorder %s209_s7, %s209_s7 }
  0x2d   : > { %p1470_p3 = pneg %p1923_p2  ;;  %p1619_p6 = scmp.ne.s32.totalorder %s209_s7, %s1618_s6 }
  0x2f   : > { %p1931_p1 = pnand %p1470_p3, %p2156_p5  ;;  %p1627_p3 = scmp.lt.s32.totalorder %s1618_s6, %s1618_s6 }
  0x31   : > { %p1609_p4 = pneg %p1931_p1  ;;  %p1628_p5 = por %p1627_p3, %p1626_p0 }
  0x33   : > { %p1621_p9 = pnand %p1619_p6, %p1609_p4 }
  0x35   : > { %p1622_p10 = pneg %p1621_p9 }
  0x37   : > { %p1629_p8 = pnand %p1628_p5, %p1622_p10 }
  0x39   : > { %1632 = shalt.err (!%p1629_p8)
}
  0x3a   : > { %s1781_s24 = smov 64   ;;  %s1782_s10 = smov 4  }
  0x3b   : > { %1473 = dma.hbm_to_vmem [thread:$0]  (!%p1931_p1), %s2154_s3, 256, %s209_s7, [#allocation12], %s1781_s24, %s1781_s24, %s1782_s10  }
  0x3c   : > { %s2172_s12 = sand.u32 1, %s1765_s17   ;;  %s1646_s21 = scalar_lea.vmem %s1940_s22, 128 }
  0x3d   : > { %s223_s1 = scalar_lea.sflag [#allocation6], %s2172_s12  ;;  %p1647_p4 = scmp.ne.s32.totalorder %s1940_s22, %s1646_s21 }
  0x3e   : > { %p2173_p5 = pneg %p1873_p7  ;;  %s1783_s6 = smov [#allocation5]  }
  0x3f   : > { %s1651_s19 = sshll.u32 %s1783_s6, 4  ;;  %s1652_s19 = int_to_ptr.vmem [resolvable:$false] %s1651_s19 }
  0x40   : > { %p1649_p8 = pnand %p1647_p4, %p2173_p5  ;;  %s1653_s28 = scalar_lea.vmem %s1652_s19, 256 }
  0x41   : > { %p1654_p9 = scmp.lt.s32.totalorder %s1940_s22, %s1652_s19  ;;  %p1655_p10 = scmp.lt.s32.totalorder %s1653_s28, %s1646_s21 }
  0x42   : > { %p1650_p6 = pneg %p1649_p8 }
  0x43   : > { %p1656_p0 = por %p1655_p10, %p1654_p9 }
  0x45   : > { %p1657_p3 = pnand %p1656_p0, %p1650_p6 }
  0x47   : > { %1660 = shalt.err (!%p1657_p3)
}
  0x48   : > { %s2174_s8 = scalar_lea.hbm %s2151_s0, %s1871_s26  ;;  %s272_s19 = scalar_lea.hbm %s2153_s2, %s1871_s26 }
  0x49   : > { %1477 = dma.hbm_to_vmem [thread:$0]  (!%p1873_p7), %s2174_s8, 128, %s1940_s22, %s223_s1  }
  0x4a   : > { %s265_s21 = scalar_lea.vmem [#allocation10], %s1868_s25  ;;  %p2175_p4 = pmov %p2173_p5 }
  0x4b   : > { %s274_s28 = sshll.u32 %s265_s21, 4  ;;  %s1784_s13 = smov [#allocation10]   ;;  %s275_s28 = int_to_ptr.vmem [resolvable:$true] %s274_s28 }
  0x4c   : > { %s1674_s11 = scalar_lea.vmem %s275_s28, 128  ;;  %s1679_s6 = sshll.u32 %s1784_s13, 4  ;;  %s1680_s6 = int_to_ptr.vmem [resolvable:$false] %s1679_s6 }
  0x4d   : > { %p1675_p1 = scmp.ne.s32.totalorder %s275_s28, %s1674_s11  ;;  %s1681_s24 = scalar_lea.vmem %s1680_s6, 256 }
  0x4e   : > { %p1682_p6 = scmp.lt.s32.totalorder %s275_s28, %s1680_s6  ;;  %p1683_p9 = scmp.lt.s32.totalorder %s1681_s24, %s1674_s11 }
  0x4f   : > { %p1677_p5 = pnand %p1675_p1, %p2175_p4 }
  0x50   : > { %p1684_p10 = por %p1683_p9, %p1682_p6 }
  0x51   : > { %p1678_p8 = pneg %p1677_p5 }
  0x53   : > { %p1685_p0 = pnand %p1684_p10, %p1678_p8 }
  0x55   : > { %1688 = shalt.err (!%p1685_p0)
}
  0x56   : > { %1483 = dma.hbm_to_vmem [thread:$0]  (!%p1873_p7), %s272_s19, 128, %s275_s28, %s1886_s9  }
  0x57   : > { %283 = sbr.rel (%p1923_p2) target bundleno = 1460 (0x5b4), region = 36  ;;  %s1979_s1 = sand.u32 (!%p1923_p2), 1, %s1761_s16  }
  0x58   : > { %s1982_s25 = sshll.u32 (!%p1923_p2), %s1979_s1, 3  ;;  %s286_s26 = scalar_lea.sflag (!%p1923_p2), [#allocation6], %s1979_s1 }
  0x59   : > { %s289_s22 = scalar_lea.vmem (!%p1923_p2), [#allocation5], %s1982_s25 }
  0x5c   : > { %1740 = dma.done.wait (%p1907_p11), %s286_s26, 128  }
  0x5d   : > { %1742 = vsyncadd (%p1907_p11), %s286_s26, 4294967168  ;;  %s294_s27 = sand.u32 1, %s1897_s14   ;;  %s298_s5 = scalar_lea.vmem [#allocation8], %s1982_s25 }
  0x5e   : > { %s295_s9 = scalar_lea.sflag [#allocation9], %s294_s27 }
  0x5f   : > { %1744 = dma.done.wait (%p1907_p11), %s295_s9, 256  }
  0x60   : > { %1746 = vsyncadd (%p1907_p11), %s295_s9, 4294967040  ;;  %s307_s7 = scalar_lea.vmem [#allocation10], %s1982_s25  ;;  %p2176_p7 = scmp.eq.s32.totalorder %s1897_s14, 0 }
  0x62   : > { %1748 = dma.done.wait (%p2176_p7), [#allocation12], 256   ;;  %p2177_p2 = pmov %p2176_p7 }
  0x63   : > { %v1785_v0 = vmov 0.0   ;;  %vm1786_vm0 = vmmov 0   ;;  %vm368_vm1 = vcmask 64512   ;;  %v363_v1 = vld [vmem:[%s298_s5] sm:$0xff]  ;;  %v362_v2 = vld [vmem:[%s289_s22] sm:$0xff]  ;;  %vm351_vm2 = vcmask 7168  }
  0x64   : > { %1750 = vsyncadd (%p2177_p2), [#allocation12], 4294967040  ;;  %1418 = vmatprep.subr.mxu0 %v1785_v0  ;;  %1420 = vmatprep.mubr.msk.f32.mxu0 %vm1786_vm0, %v1785_v0  ;;  %v365_v3 = vmul.f32 0.5, %v362_v2  ;;  %v1787_v4 = vmov -inf   ;;  %356 = vst.msk [vmem:[#allocation3] sm:$0xff] %vm351_vm2, %v1785_v0  ;;  %v366_v5 = vld [vmem:[#allocation11] sm:$0xff]  }
  0x65   : > { %1423 = vmatprep.subr.mxu1 %v1785_v0  ;;  %1425 = vmatprep.mubr.msk.f32.mxu1 %vm1786_vm0, %v1785_v0  ;;  %352 = vst.msk [vmem:[#allocation2] sm:$0xff] %vm351_vm2, %v1787_v4  ;;  %353 = vst.msk [vmem:[#allocation2 + $0x8] sm:$0xff] %vm351_vm2, %v1787_v4  ;;  %v367_v6 = vunpack.c.l.bf16 %v366_v5  ;;  %v1788_v11 = vmov 0   ;;  %s1789_s14 = smov 120   ;;  %s1790_s23 = smov 112   ;;  %v2034_v16 = vld [vmem:[%s307_s7] sm:$0xff]  ;;  %v558_v28 = vunpack.c.h.bf16 %v366_v5 }
  0x66   : > { %1419 = vmatpush3.xpose.msk.msra.mxu0 %vm368_vm1, %v363_v1  ;;  %354 = vst.msk [vmem:[#allocation2 + $0x10] sm:$0xff] %vm351_vm2, %v1787_v4  ;;  %355 = vst.msk [vmem:[#allocation2 + $0x18] sm:$0xff] %vm351_vm2, %v1787_v4  ;;  %1553 = vset.pattern.permute.xlu0 %v1788_v11  ;;  %s1791_s8 = smov 104   ;;  %v761_v30 = vld [vmem:[#allocation11 + $0x8] sm:$0xff]   ;;  %vm360_vm3 = vcmask 261120   ;;  %s1792_s12 = smov 8  }
  0x67   : > { %1433 = vmatprep.subr.mxu0 %v1785_v0  ;;  %357 = vst.msk [vmem:[#allocation3 + $0x8] sm:$0xff] %vm351_vm2, %v1785_v0  ;;  %358 = vst.msk [vmem:[#allocation3 + $0x10] sm:$0xff] %vm351_vm2, %v1785_v0  ;;  %1554 = vset.pattern.permute.xlu1 %v1788_v11  ;;  %v762_v33 = vunpack.c.l.bf16 %v761_v30  ;;  %v966_v38 = vunpack.c.h.bf16 %v761_v30  ;;  %s1793_s10 = smov 16   ;;  %s1794_s19 = smov 24   ;;  %vm753_vm4 = vcmask 130112   ;;  %vm957_vm5 = vcmask 195712  }
  0x68   : > { %359 = vst.msk [vmem:[#allocation3 + $0x18] sm:$0xff] %vm351_vm2, %v1785_v0  ;;  %563 = vrot.lane.b32.xlu1 %v363_v1, %s1789_s14  ;;  %1424 = vmatpush3.msra.mxu1 %v2034_v16  ;;  %vm1161_vm6 = vcmask 261312   ;;  %s1399_s21 = sshll.u32 %s1769_s18, 7  ;;  %s345_s28 = scalar_lea.vmem [#allocation13], %s1982_s25 }
  0x69   : > { %1421 = vmatmul.mubr.msk.f32.vlgmr.msra.gmra.mxu0 %vm368_vm1, %v365_v3  ;;  %1428 = vmatprep.subr.mxu1 %v1785_v0  ;;  %361 = vst.msk [vmem:[#allocation4] sm:$0xff] %vm360_vm3, %v1785_v0  ;;  %s1225_s11 = sshll.u32 %s345_s28, 4  ;;  %s2108_s24 = scalar_lea.hbm %s2155_s4, %s1399_s21  ;;  %s1226_s11 = int_to_ptr.vmem [resolvable:$true] %s1225_s11 }
  0x6a   : > { %1435 = vmatprep.mubr.msk.f32.mxu0 %vm1786_vm0, %v1785_v0  ;;  %s1211_s26 = scalar_lea.sflag [#allocation7], %s1979_s1  ;;  %s1689_s22 = scalar_lea.vmem %s1226_s11, 128 }
  0x6b   : > { %p1690_p11 = scmp.ne.s32.totalorder %s1226_s11, %s1689_s22  ;;  %s1795_s27 = smov [#allocation13]  }
  0x6c   : > { %560 = vrot.lane.b32.xlu1 %v365_v3, %s1789_s14  ;;  %v445_v12 = vld [vmem:[#allocation2] sm:$0xff]  ;;  %v640_v46 = vld [vmem:[#allocation2 + $0x8] sm:$0xff]  ;;  %s1693_s9 = sshll.u32 %s1795_s27, 4  ;;  %s1694_s9 = int_to_ptr.vmem [resolvable:$false] %s1693_s9 }
  0x6d   : > { %v844_v49 = vld [vmem:[#allocation2 + $0x10] sm:$0xff]  ;;  %v2064_v53 = vld [vmem:[#allocation2 + $0x18] sm:$0xff]  ;;  %p1691_p3 = pnand %p1690_p11, %p1914_p12  ;;  %s1695_s18 = scalar_lea.vmem %s1694_s9, 256 }
  0x6e   : > { %v861_v30 = vld [vmem:[#allocation3 + $0x10] sm:$0xff]  ;;  %p1696_p4 = scmp.lt.s32.totalorder %s1226_s11, %s1694_s9  ;;  %p1697_p5 = scmp.lt.s32.totalorder %s1695_s18, %s1689_s22 }
  0x6f   : > { %p1692_p1 = pneg %p1691_p3 }
  0x70   : > { %767 = vrot.lane.b32.xlu1 %v363_v1, %s1790_s23  ;;  %p1698_p8 = por %p1697_p5, %p1696_p4 }
  0x72   : > { %p1699_p6 = pnand %p1698_p8, %p1692_p1 }
  0x74   : > { %764 = vrot.lane.b32.xlu1 %v365_v3, %s1790_s23 }
  0x78   : > { %971 = vrot.lane.b32.xlu1 %v363_v1, %s1791_s8 }
  0x7c   : > { %968 = vrot.lane.b32.xlu1 %v365_v3, %s1791_s8  ;;  %v542_v3 = vld [vmem:[#allocation4] sm:$0xff] }
  0xda   : > { %v564_v17 = vpop.permute.xlu1 %563 }
  0xde   : > { %v561_v21 = vpop.permute.xlu1 %560 }
  0xe2   : > { %v768_v22 = vpop.permute.xlu1 %767 }
  0xe6   : > { %v765_v23 = vpop.permute.xlu1 %764 }
  0xea   : > { %v972_v25 = vpop.permute.xlu1 %971 }
  0xee   : > { %v969_v26 = vpop.permute.xlu1 %968 }
 0x129   : > { %v441_v7 = vpop.f32.mrf.mxu0 }
 0x12a   : > { %v442_v8 = vadd.f32 %v441_v7, %v367_v6 }
 0x12b   : > { %v1422_v9 = vpop.f32.mrf.mxu0 }
 0x12c   : > { %v446_v10 = vsel %vm368_vm1, %v442_v8, -inf }
 0x12d   : > { %447 = vmax.xlane.f32.xlu0 %v446_v10 }
 0x1b6   : > { %v448_v13 = vpop.xlane.xlu0 %447 }
 0x1b7   : > { %v449_v14 = vmax.f32 %v445_v12, %v448_v13 }
 0x1b9   : > { %v450_v15 = vsub.f32 %v445_v12, %v449_v14  ;;  %551 = vst.msk [vmem:[#allocation2] sm:$0xff] %vm351_vm2, %v449_v14  ;;  %455 = vperm.xlu0 %1553, %v449_v14  }
 0x1bb   : > { %v451_v45 = vmul.f32 1.442695, %v450_v15 }
 0x234   : > { %v456_v18 = vpop.permute.xlu0 %455 }
 0x235   : > { %v458_v19 = vsub.f32 %v442_v8, %v456_v18 }
 0x237   : > { %v459_v20 = vmul.f32 1.442695, %v458_v19 }
 0x239   : > { %1555 = vpow2.f32 %v459_v20 }
 0x23a   : > { %1557 = vpow2.f32 %v451_v45 }
 0x246   : > { %v2038_v24 = vpop.eup %1555 }
 0x247   : > { %1426 = vmatmul.mubr.msk.f32.vlgmr.msra.gmra.mxu1 %vm368_vm1, %v2038_v24  ;;  %v1558_v57 = vpop.eup %1557  ;;  %v463_v59 = vsel %vm368_vm1, %v2038_v24, 0.0 }
 0x248   : > { %1429 = vmatpush3.xpose.msk.msra.mxu1 %vm368_vm1, %v564_v17  ;;  %1430 = vmatprep.mubr.msk.f32.mxu1 %vm1786_vm0, %v1785_v0 }
 0x249   : > { %1438 = vmatprep.subr.mxu1 %v1785_v0 }
 0x24b   : > { %1431 = vmatmul.mubr.msk.f32.vlgmr.msra.gmra.mxu1 %vm368_vm1, %v561_v21 }
 0x24c   : > { %1439 = vmatpush3.xpose.msk.msra.mxu1 %vm368_vm1, %v768_v22  ;;  %1440 = vmatprep.mubr.msk.f32.mxu1 %vm1786_vm0, %v1785_v0 }
 0x24d   : > { %1448 = vmatprep.subr.mxu1 %v1785_v0 }
 0x24f   : > { %1441 = vmatmul.mubr.msk.f32.vlgmr.msra.gmra.mxu1 %vm368_vm1, %v765_v23  ;;  %v461_v23 = vld [vmem:[#allocation3] sm:$0xff] }
 0x250   : > { %1449 = vmatpush3.xpose.msk.msra.mxu1 %vm368_vm1, %v972_v25  ;;  %1450 = vmatprep.mubr.msk.f32.mxu1 %vm1786_vm0, %v1785_v0  ;;  %v462_v24 = vmul.f32 %v1558_v57, %v461_v23 }
 0x253   : > { %1451 = vmatmul.mubr.msk.f32.vlgmr.msra.gmra.mxu1 %vm368_vm1, %v969_v26 }
 0x307   : > { %v2056_v27 = vpop.f32.mrf.mxu1 }
 0x309   : > { %v1427_v29 = vpop.f32.mrf.mxu1 }
 0x30b   : > { %v635_v31 = vpop.f32.mrf.mxu1 }
 0x30c   : > { %v636_v32 = vadd.f32 %v635_v31, %v558_v28 }
 0x30d   : > { %v1432_v34 = vpop.f32.mrf.mxu1 }
 0x30e   : > { %v641_v35 = vsel %vm368_vm1, %v636_v32, -inf }
 0x30f   : > { %642 = vmax.xlane.f32.xlu1 %v641_v35  ;;  %v839_v36 = vpop.f32.mrf.mxu1  ;;  %v1065_v35 = vld [vmem:[#allocation3 + $0x18] sm:$0xff] }
 0x310   : > { %v840_v37 = vadd.f32 %v839_v36, %v762_v33 }
 0x311   : > { %v1442_v39 = vpop.f32.mrf.mxu1 }
 0x312   : > { %v845_v40 = vsel %vm368_vm1, %v840_v37, -inf }
 0x313   : > { %846 = vmax.xlane.f32.xlu0 %v845_v40  ;;  %v1043_v41 = vpop.f32.mrf.mxu1 }
 0x314   : > { %v1044_v42 = vadd.f32 %v1043_v41, %v966_v38 }
 0x315   : > { %v1452_v43 = vpop.f32.mrf.mxu1 }
 0x316   : > { %v1049_v44 = vsel %vm368_vm1, %v1044_v42, -inf }
 0x317   : > { %1050 = vmax.xlane.f32.xlu1 %v1049_v44 }
 0x398   : > { %v643_v47 = vpop.xlane.xlu1 %642 }
 0x399   : > { %v644_v48 = vmax.f32 %v640_v46, %v643_v47 }
 0x39b   : > { %v645_v50 = vsub.f32 %v640_v46, %v644_v48  ;;  %755 = vst.msk [vmem:[#allocation2 + $0x8] sm:$0xff] %vm351_vm2, %v644_v48  ;;  %650 = vperm.xlu1 %1554, %v644_v48  }
 0x39c   : > { %v847_v51 = vpop.xlane.xlu0 %846 }
 0x39d   : > { %v848_v52 = vmax.f32 %v844_v49, %v847_v51 }
 0x39f   : > { %v849_v54 = vsub.f32 %v844_v49, %v848_v52  ;;  %959 = vst.msk [vmem:[#allocation2 + $0x10] sm:$0xff] %vm351_vm2, %v848_v52  ;;  %854 = vperm.xlu0 %1553, %v848_v52   ;;  %665 = vrot.lane.b32.xlu1 %v2034_v16, %s1789_s14 }
 0x3a0   : > { %v1051_v55 = vpop.xlane.xlu1 %1050 }
 0x3a1   : > { %v1052_v56 = vmax.f32 %v2064_v53, %v1051_v55  ;;  %v850_v19 = vmul.f32 1.442695, %v849_v54 }
 0x3a3   : > { %v1053_v58 = vsub.f32 %v2064_v53, %v1052_v56  ;;  %1163 = vst.msk [vmem:[#allocation2 + $0x18] sm:$0xff] %vm351_vm2, %v1052_v56  ;;  %1058 = vperm.xlu1 %1554, %v1052_v56   ;;  %545 = vperm.xlu0 %1553, %v1558_v57  }
 0x3a7   : > { %869 = vrot.lane.b32.xlu1 %v2034_v16, %s1790_s23 }
 0x3ab   : > { %1073 = vrot.lane.b32.xlu1 %v2034_v16, %s1791_s8  ;;  %v646_v16 = vmul.f32 1.442695, %v645_v50 }
 0x3cf   : > { %464 = vadd.xlane.f32.xlu1 %v463_v59 }
 0x416   : > { %v651_v60 = vpop.permute.xlu1 %650 }
 0x417   : > { %v653_v61 = vsub.f32 %v636_v32, %v651_v60 }
 0x419   : > { %v654_v62 = vmul.f32 1.442695, %v653_v61 }
 0x41a   : > { %v855_v63 = vpop.permute.xlu0 %854  ;;  %v666_v1 = vpop.permute.xlu1 %665 }
 0x41b   : > { %1559 = vpow2.f32 %v654_v62  ;;  %v857_v2 = vsub.f32 %v840_v37, %v855_v63  ;;  %1434 = vmatpush3.msra.mxu0 %v666_v1 }
 0x41c   : > { %1443 = vmatprep.subr.mxu0 %v1785_v0 }
 0x41d   : > { %v858_v4 = vmul.f32 1.442695, %v857_v2 }
 0x41e   : > { %v1059_v5 = vpop.permute.xlu1 %1058  ;;  %v546_v6 = vpop.permute.xlu0 %545 }
 0x41f   : > { %1561 = vpow2.f32 %v858_v4  ;;  %v1061_v7 = vsub.f32 %v1044_v42, %v1059_v5  ;;  %v548_v8 = vmul.f32 %v546_v6, %v542_v3 }
 0x421   : > { %v1062_v9 = vmul.f32 1.442695, %v1061_v7  ;;  %v549_v10 = vadd.f32 %v548_v8, %v2056_v27  ;;  %v657_v27 = vld [vmem:[#allocation3 + $0x8] sm:$0xff] }
 0x422   : > { %v870_v11 = vpop.permute.xlu1 %869 }
 0x423   : > { %1563 = vpow2.f32 %v1062_v9  ;;  %550 = vst.msk [vmem:[#allocation4] sm:$0xff] %vm368_vm1, %v549_v10 }
 0x424   : > { %1565 = vpow2.f32 %v646_v16 }
 0x425   : > { %1567 = vpow2.f32 %v850_v19 }
 0x426   : > { %v1074_v14 = vpop.permute.xlu1 %1073 }
 0x428   : > { %v1560_v12 = vpop.eup %1559 }
 0x429   : > { %1436 = vmatmul.mubr.msk.f32.vlgmr.msra.gmra.mxu0 %vm368_vm1, %v1560_v12  ;;  %v659_v13 = vsel %vm368_vm1, %v1560_v12, 0.0 }
 0x42a   : > { %660 = vadd.xlane.f32.xlu0 %v659_v13  ;;  %1444 = vmatpush3.msra.mxu0 %v870_v11  ;;  %v741_v55 = vld [vmem:[#allocation4] sm:$0xff] }
 0x42b   : > { %1445 = vmatprep.mubr.msk.f32.mxu0 %vm1786_vm0, %v1785_v0  ;;  %1453 = vmatprep.subr.mxu0 %v1785_v0 }
 0x42c   : > { %v1562_v15 = vpop.eup %1561 }
 0x42d   : > { %1446 = vmatmul.mubr.msk.f32.vlgmr.msra.gmra.mxu0 %vm368_vm1, %v1562_v15  ;;  %v863_v17 = vsel %vm368_vm1, %v1562_v15, 0.0 }
 0x42e   : > { %864 = vadd.xlane.f32.xlu1 %v863_v17  ;;  %1454 = vmatpush3.msra.mxu0 %v1074_v14 }
 0x42f   : > { %1455 = vmatprep.mubr.msk.f32.mxu0 %vm1786_vm0, %v1785_v0  ;;  %v1054_v0 = vmul.f32 1.442695, %v1053_v58 }
 0x430   : > { %v1564_v18 = vpop.eup %1563 }
 0x431   : > { %1456 = vmatmul.mubr.msk.f32.vlgmr.msra.gmra.mxu0 %vm368_vm1, %v1564_v18  ;;  %v1067_v20 = vsel %vm368_vm1, %v1564_v18, 0.0  ;;  %v1566_v21 = vpop.eup %1565  ;;  %1569 = vpow2.f32 %v1054_v0 }
 0x432   : > { %1068 = vadd.xlane.f32.xlu0 %v1067_v20  ;;  %v1568_v22 = vpop.eup %1567  ;;  %v658_v28 = vmul.f32 %v1566_v21, %v657_v27 }
 0x433   : > { %v862_v32 = vmul.f32 %v1568_v22, %v861_v30 }
 0x43e   : > { %v1570_v33 = vpop.eup %1569 }
 0x43f   : > { %744 = vperm.xlu1 %1554, %v1566_v21   ;;  %v1066_v37 = vmul.f32 %v1570_v33, %v1065_v35 }
 0x443   : > { %948 = vperm.xlu1 %1554, %v1568_v22  }
 0x458   : > { %v465_v25 = vpop.xlane.xlu1 %464 }
 0x459   : > { %v466_v26 = vadd.f32 %v465_v25, %v462_v24 }
 0x45b   : > { %468 = vst.msk [vmem:[#allocation3] sm:$0xff] %vm351_vm2, %v466_v26 }
 0x462   : > { %v1167_v40 = vld [vmem:[#allocation3] sm:$0xff] }
 0x463   : > { %1571 = vrcp.f32 %v1167_v40 }
 0x470   : > { %v1572_v48 = vpop.eup %1571 }
 0x4b3   : > { %v661_v29 = vpop.xlane.xlu0 %660 }
 0x4b4   : > { %v662_v31 = vadd.f32 %v661_v29, %v658_v28 }
 0x4b6   : > { %663 = vst.msk [vmem:[#allocation3 + $0x8] sm:$0xff] %vm351_vm2, %v662_v31 }
 0x4b7   : > { %v865_v34 = vpop.xlane.xlu1 %864 }
 0x4b8   : > { %v866_v36 = vadd.f32 %v865_v34, %v862_v32 }
 0x4ba   : > { %867 = vst.msk [vmem:[#allocation3 + $0x10] sm:$0xff] %vm351_vm2, %v866_v36 }
 0x4bb   : > { %v1069_v38 = vpop.xlane.xlu0 %1068  ;;  %v745_v54 = vpop.permute.xlu1 %744 }
 0x4bc   : > { %v1070_v39 = vadd.f32 %v1069_v38, %v1066_v37  ;;  %v747_v56 = vmul.f32 %v745_v54, %v741_v55 }
 0x4bd   : > { %v1177_v41 = vld [vmem:[#allocation3 + $0x8] sm:$0xff] }
 0x4be   : > { %1071 = vst.msk [vmem:[#allocation3 + $0x18] sm:$0xff] %vm351_vm2, %v1070_v39  ;;  %1573 = vrcp.f32 %v1177_v41 }
 0x4bf   : > { %v949_v59 = vpop.permute.xlu1 %948 }
 0x4c1   : > { %v1187_v42 = vld [vmem:[#allocation3 + $0x10] sm:$0xff] }
 0x4c2   : > { %1575 = vrcp.f32 %v1187_v42 }
 0x4c5   : > { %v1197_v44 = vld [vmem:[#allocation3 + $0x18] sm:$0xff] }
 0x4c6   : > { %1577 = vrcp.f32 %v1197_v44 }
 0x4cb   : > { %v1574_v51 = vpop.eup %1573 }
 0x4cf   : > { %v1576_v52 = vpop.eup %1575 }
 0x4d3   : > { %v1578_v53 = vpop.eup %1577 }
 0x4e9   : > { %v737_v43 = vpop.f32.mrf.mxu0 }
 0x4ea   : > { %749 = vrot.lane.b32.xlu0 %v737_v43, %s1792_s12 }
 0x4eb   : > { %v1437_v45 = vpop.f32.mrf.mxu0 }
 0x4ed   : > { %v941_v46 = vpop.f32.mrf.mxu0 }
 0x4ee   : > { %953 = vrot.lane.b32.xlu1 %v941_v46, %s1793_s10  ;;  %1152 = vperm.xlu0 %1553, %v1570_v33  }
 0x4ef   : > { %v1447_v47 = vpop.f32.mrf.mxu0 }
 0x4f1   : > { %v1145_v49 = vpop.f32.mrf.mxu0 }
 0x4f2   : > { %1157 = vrot.lane.b32.xlu1 %v1145_v49, %s1794_s19  ;;  %1172 = vperm.xlu0 %1553, %v1572_v48  }
 0x4f3   : > { %v1457_v50 = vpop.f32.mrf.mxu0 }
 0x4f6   : > { %1182 = vperm.xlu1 %1554, %v1574_v51   ;;  %1192 = vperm.xlu0 %1553, %v1576_v52  }
 0x4fa   : > { %1202 = vperm.xlu1 %1554, %v1578_v53  }
 0x55c   : > { %v750_v57 = vpop.permute.xlu0 %749 }
 0x55d   : > { %v752_v58 = vadd.f32 %v750_v57, %v747_v56 }
 0x55f   : > { %754 = vst.msk [vmem:[#allocation4] sm:$0xff] %vm753_vm4, %v752_v58 }
 0x560   : > { %v954_v62 = vpop.permute.xlu1 %953 }
 0x564   : > { %v1158_v4 = vpop.permute.xlu1 %1157 }
 0x566   : > { %v945_v60 = vld [vmem:[#allocation4] sm:$0xff] }
 0x567   : > { %v951_v61 = vmul.f32 %v949_v59, %v945_v60 }
 0x569   : > { %v956_v63 = vadd.f32 %v954_v62, %v951_v61  ;;  %v1153_v2 = vpop.permute.xlu0 %1152 }
 0x56b   : > { %958 = vst.msk [vmem:[#allocation4] sm:$0xff] %vm957_vm5, %v956_v63 }
 0x56d   : > { %v1173_v7 = vpop.permute.xlu0 %1172 }
 0x571   : > { %v1183_v9 = vpop.permute.xlu1 %1182  ;;  %v1193_v13 = vpop.permute.xlu0 %1192 }
 0x572   : > { %v1149_v1 = vld [vmem:[#allocation4] sm:$0xff] }
 0x573   : > { %v1155_v3 = vmul.f32 %v1153_v2, %v1149_v1 }
 0x575   : > { %v1160_v5 = vadd.f32 %v1158_v4, %v1155_v3  ;;  %v1203_v15 = vpop.permute.xlu1 %1202 }
 0x577   : > { %1162 = vst.msk [vmem:[#allocation4] sm:$0xff] %vm1161_vm6, %v1160_v5 }
 0x57e   : > { %v1169_v6 = vld [vmem:[#allocation4] sm:$0xff] }
 0x57f   : > { %v1175_v8 = vmul.f32 %v1173_v7, %v1169_v6 }
 0x581   : > { %1176 = vst.msk [vmem:[#allocation4] sm:$0xff] %vm368_vm1, %v1175_v8 }
 0x588   : > { %v1179_v10 = vld [vmem:[#allocation4] sm:$0xff] }
 0x589   : > { %v1185_v11 = vmul.f32 %v1183_v9, %v1179_v10 }
 0x58b   : > { %1186 = vst.msk [vmem:[#allocation4] sm:$0xff] %vm753_vm4, %v1185_v11 }
 0x592   : > { %v1189_v12 = vld [vmem:[#allocation4] sm:$0xff] }
 0x593   : > { %v1195_v14 = vmul.f32 %v1193_v13, %v1189_v12 }
 0x595   : > { %1196 = vst.msk [vmem:[#allocation4] sm:$0xff] %vm957_vm5, %v1195_v14 }
 0x59c   : > { %v1199_v16 = vld [vmem:[#allocation4] sm:$0xff] }
 0x59d   : > { %v1205_v17 = vmul.f32 %v1203_v15, %v1199_v16 }
 0x59f   : > { %1206 = vst.msk [vmem:[#allocation4] sm:$0xff] %vm1161_vm6, %v1205_v17 }
 0x5a6   : > { %v1207_v18 = vld [vmem:[#allocation4] sm:$0xff] }
 0x5a7   : > { %1209 = vst.msk [vmem:[%s345_s28] sm:$0xff] %vm360_vm3, %v1207_v18 }
 0x5a8   : > { %1702 = shalt.err (!%p1699_p6)
}
 0x5a9   : > { %s1703_s25 = scalar_lea.hbm %s2108_s24, 128  ;;  %s1707_s7 = scalar_lea.hbm %s2155_s4, 256 }
 0x5aa   : > { %p1704_p9 = scmp.ne.s32.totalorder %s2108_s24, %s1703_s25  ;;  %p1708_p7 = scmp.lt.s32.totalorder %s2108_s24, %s2155_s4 }
 0x5ab   : > { %p1709_p2 = scmp.lt.s32.totalorder %s1707_s7, %s1703_s25 }
 0x5ac   : > { %p1705_p10 = pnand %p1704_p9, %p1914_p12 }
 0x5ad   : > { %p1710_p11 = por %p1709_p2, %p1708_p7 }
 0x5ae   : > { %p1706_p0 = pneg %p1705_p10 }
 0x5b0   : > { %p1711_p3 = pnand %p1710_p11, %p1706_p0 }
 0x5b2   : > { %1714 = shalt.err (!%p1711_p3)
}
 0x5b3   : > { %1468 = dma.vmem_to_hbm [thread:$0]  (%p1914_p12), %s1226_s11, 128, %s2108_s24, %s1211_s26  }
 0x5b4 PF: > { %s1237_s8 = sand.u32 1, %s1757_s15   ;;  %p2178_p1 = scmp.ge.s32.totalorder %s1777_s20, 2 }
 0x5b5   : > { %s1238_s12 = scalar_lea.sflag [#allocation7], %s1237_s8 }
 0x5b6   : > { %p1485_p4 = pnand %p2178_p1, %p1918_p13 }
 0x5b8   : > { %p1486_p5 = pneg %p1485_p4 }
 0x5ba   : > { %1752 = dma.done.wait (%p1486_p5), %s1238_s12, 128  }
 0x5bb   : > { %1754 = vsyncadd (%p1486_p5), %s1238_s12, 4294967168  ;;  %s24_s20 = sadd.s32 1, %s1777_s20   ;;  %s2179_s29 = sld [smem:[#allocation20_spill]] }
 0x5bc   : > { %p21_p8 = scmp.ge.s32.totalorder %s24_s20, 4   ;;  %s2180_s18 = sld [smem:[#allocation18_spill]] }
 0x5bd   : > { %s2181_s19 = sld [smem:[#allocation19_spill]]  ;;  %s2182_s15 = smov %s1761_s16 }
 0x5be   : > { %s2183_s16 = smov %s1765_s17  ;;  %23 = sbr.rel (!%p21_p8) target bundleno = 11 (0xb), region = 127 }
 0x5c1   : > { %s2184_s17 = smov %s2179_s29 }
 0x5c3   :  { %1243 = vsyncpa [#allocation6], 1 }
 0x5c4   :  { %1245 = vsyncpa [#allocation6 + $0x1], 1 }
 0x5c5   :  { %1246 = vsyncpa [#allocation9], 1 }
 0x5c6   :  { %1248 = vsyncpa [#allocation9 + $0x1], 1 }
 0x5c7   :  { %1249 = vsyncpa [#allocation12], 1 }
 0x5c8   :  { %1250 = vsyncpa [#allocation7], 1 }
 0x5c9   :  { %1252 = vsyncpa [#allocation7 + $0x1], 1 }

</bundles_post_ra>
